<compile_context>
chip_gen: v7x
topology: tpu7x:2x2x1
jax: 0.10.0
libtpu: 0.0.40
codegen_flags: <defaults>
</compile_context>

<pallas_src>
import functools
import math

import numpy as np

import jax
import jax.numpy as jnp
from jax import lax
from jax.experimental import pallas as pl
from jax.experimental.pallas import tpu as pltpu


# ----------------------------------------------------------------------------
# Host-side helpers
# ----------------------------------------------------------------------------
def _bilinear_weight_matrix(in_size, out_size, pad_to):
    """Interpolation matrix: rows = output pixels (zero rows above out_size so
    the matmul writes batch_images' zero padding), cols = input pixels.
    Matches torch F.interpolate(mode='bilinear', align_corners=False,
    recompute_scale_factor=True) source-index math."""
    scale = np.float32(in_size) / np.float32(out_size)
    dst = np.arange(out_size, dtype=np.float32)
    src = scale * (dst + np.float32(0.5)) - np.float32(0.5)
    src = np.maximum(src, np.float32(0.0))
    x0 = np.minimum(np.floor(src).astype(np.int32), in_size - 1)
    x1 = np.minimum(x0 + 1, in_size - 1)
    lam = (src - x0.astype(np.float32)).astype(np.float32)

    w = np.zeros((pad_to, in_size), dtype=np.float32)
    rows = np.arange(out_size)
    np.add.at(w, (rows, x0), 1.0 - lam)
    np.add.at(w, (rows, x1), lam)
    return w


def _pick_row_tile(pad_h, c, h, w, pad_w, elem_in, elem_out, fixed_bytes,
                   max_tile=256, vmem_cap=40 * 1024 * 1024):
    """Output-row tile `th`: the largest multiple-of-8 divisor of pad_h (target
    256 for MXU M fill) whose total VMEM footprint stays under `vmem_cap`.
    Returns (th, estimated VMEM bytes)."""

    def need(th):
        return (fixed_bytes
                + 2 * c * th * pad_w * elem_out   # out canvas block (dbl-buffered)
                + 2 * th * h * elem_in            # Wy row tile      (dbl-buffered)
                + th * w * (4 + elem_in)          # height band f32 + narrow copy
                + th * pad_w * (4 + elem_out))    # width result f32 + store cast

    cands = [t for t in range(8, min(pad_h, max_tile) + 1, 8)
             if pad_h % t == 0 and need(t) <= vmem_cap]
    if not cands:
        th = 8 if pad_h % 8 == 0 else pad_h
        return th, need(th)
    best = max(cands)
    # prefer >= 2 grid steps when a >=128 tile is still available (v7x megacore)
    multi = [t for t in cands if pad_h // t >= 2]
    if pad_h // best < 2 and multi and max(multi) >= 128:
        best = max(multi)
    return best, need(best)


# ----------------------------------------------------------------------------
# Pallas kernel
# ----------------------------------------------------------------------------
def _make_resize_kernel(c, oh, ow, th, pad_w, inv_std, bias, aliased_canvas):
    """Per (image, row-tile) grid step: resize via two MXU matmuls (f32 acc)
    and apply the folded per-channel normalize affine on valid pixels only.
    Padding stays exactly zero (zero rows/cols of Wy / Wx^T, masked bias)."""

    def body(img_ref, wy_ref, wxt_ref, out_ref):
        wy = wy_ref[...]                       # (th, H)
        wxt = wxt_ref[...]                     # (W, pad_w)
        row0 = pl.program_id(1) * th
        rows = lax.broadcasted_iota(jnp.int32, (th, pad_w), 0) + row0
        cols = lax.broadcasted_iota(jnp.int32, (th, pad_w), 1)
        # hoisted once per tile, shared by every channel's epilogue
        valid = jnp.logical_and(rows < oh, cols < ow).astype(jnp.float32)

        for ch in range(c):                    # C is tiny & static
            # height interpolation for this row tile: (th, H) @ (H, W)
            band = jnp.dot(wy, img_ref[0, ch],
                           preferred_element_type=jnp.float32)
            # width interpolation: (th, W) @ (W, pad_w)
            y = jnp.dot(band.astype(wxt.dtype), wxt,
                        preferred_element_type=jnp.float32)
            out_ref[0, ch, :, :] = (inv_std[ch] * y
                                    + bias[ch] * valid).astype(out_ref.dtype)

    if aliased_canvas:
        # extra, never-touched HBM ref that only carries the in-place alias
        def kernel(img_ref, wy_ref, wxt_ref, _canvas_hbm_ref, out_ref):
            body(img_ref, wy_ref, wxt_ref, out_ref)
    else:
        def kernel(img_ref, wy_ref, wxt_ref, out_ref):
            body(img_ref, wy_ref, wxt_ref, out_ref)
    return kernel


def _make_run_writer(base, count, sig, n, max_c, pad_h, pad_w, mean, std,
                     out_dtype, compute_dtype, create_canvas):
    """Writer for one run of `count` consecutive images sharing a signature:
    (canvas, [imgs...]) -> canvas with batch slots [base, base+count) written."""
    c, h, w, oh, ow = sig
    elem_in = int(np.dtype(compute_dtype).itemsize)
    elem_out = int(np.dtype(out_dtype).itemsize)
    # resident VMEM: image block (double-buffered across the image grid axis,
    # so the next image's DMA hides under the current matmuls) + whole Wx^T.
    fixed = 2 * c * h * w * elem_in + w * pad_w * elem_in
    th, vmem_need = _pick_row_tile(pad_h, c, h, w, pad_w, elem_in, elem_out, fixed)

    wy = jnp.asarray(_bilinear_weight_matrix(h, oh, pad_h), compute_dtype)     # (pad_h, H)
    wxt = jnp.asarray(_bilinear_weight_matrix(w, ow, pad_w).T, compute_dtype)  # (W, pad_w)

    inv_std = tuple(1.0 / float(std[i]) for i in range(c))
    bias = tuple(-float(mean[i]) / float(std[i]) for i in range(c))
    kernel = _make_resize_kernel(c, oh, ow, th, pad_w, inv_std, bias,
                                 aliased_canvas=not create_canvas)

    in_specs = [
        pl.BlockSpec((1, c, h, w), lambda g, t: (g, 0, 0, 0)),   # image (per g)
        pl.BlockSpec((th, h), lambda g, t: (t, 0)),              # Wy row tile
        pl.BlockSpec(memory_space=pltpu.MemorySpace.VMEM),       # Wx^T resident
    ]
    io_alias = {}
    if not create_canvas:
        # alias only -- no per-step DMA of the never-read canvas block
        in_specs.append(pl.BlockSpec(memory_space=pl.ANY))
        io_alias = {3: 0}

    vmem_limit = int(min(max(vmem_need * 5 // 4 + (4 << 20), 32 << 20), 64 << 20))

    writer = pl.pallas_call(
        kernel,
        out_shape=jax.ShapeDtypeStruct((n, max_c, pad_h, pad_w), out_dtype),
        grid=(count, pad_h // th),
        in_specs=in_specs,
        out_specs=pl.BlockSpec((1, c, th, pad_w),
                               lambda g, t: (base + g, 0, t, 0)),
        input_output_aliases=io_alias,
        compiler_params=pltpu.CompilerParams(
            dimension_semantics=("parallel", "parallel"),
            vmem_limit_bytes=vmem_limit),
    )

    def write(canvas, group_imgs):
        imgs = [im if im.dtype == compute_dtype else im.astype(compute_dtype)
                for im in group_imgs]
        stacked = imgs[0][None] if len(imgs) == 1 else jnp.stack(imgs)
        if create_canvas:
            return writer(stacked, wy, wxt)
        return writer(stacked, wy, wxt, canvas)

    return write


@functools.lru_cache(maxsize=None)
def _get_batch_fn(sigs, max_c, pad_h, pad_w, mean, std, out_dtype, compute_dtype):
    """Jitted (img0, img1, ...) -> (N, max_c, pad_h, pad_w) canvas, cached per
    shape signature (weights built & transferred once, compiled once)."""
    n = len(sigs)

    # fold consecutive images with identical signatures into one pallas_call
    runs = []                                        # (base_index, count, sig)
    i = 0
    while i < n:
        j = i
        while j < n and sigs[j] == sigs[i]:
            j += 1
        runs.append((i, j - i, sigs[i]))
        i = j

    # The kernels write every (channel, row, col) of every slot they own, so
    # the zeros init is only needed when some image has fewer channels.
    need_zero = any(sig[0] < max_c for sig in sigs)

    writers = []
    for r, (base, count, sig) in enumerate(runs):
        create = (not need_zero) and (r == 0)
        writers.append(_make_run_writer(base, count, sig, n, max_c, pad_h,
                                        pad_w, mean, std, out_dtype,
                                        compute_dtype, create_canvas=create))

    def batch_fn(*imgs):
        canvas = (jnp.zeros((n, max_c, pad_h, pad_w), out_dtype)
                  if need_zero else None)
        for (base, count, _), write in zip(runs, writers):
            canvas = write(canvas, imgs[base:base + count])
        return canvas

    return jax.jit(batch_fn)


# ----------------------------------------------------------------------------
# Module wrapper (forward semantics of GeneralizedRCNNTransform)
# ----------------------------------------------------------------------------
class GeneralizedRCNNTransformPallas:
    """JAX/Pallas equivalent of GeneralizedRCNNTransform.forward.

    __call__ takes a list of CHW float images and returns (batched_images,
    image_sizes): the zero-padded NCHW tensor and the post-resize (H, W)
    sizes -- the two ImageList fields.  postprocess / resize_boxes /
    paste_masks_in_image are not part of forward() and are left out.
    """

    def __init__(self, min_size, max_size, image_mean, image_std,
                 size_divisible=32, fixed_size=None,
                 out_dtype=jnp.float32, compute_dtype=jnp.bfloat16):
        if not isinstance(min_size, (list, tuple)):
            min_size = (min_size,)
        self.min_size = tuple(int(m) for m in min_size)
        self.max_size = int(max_size)
        self.image_mean = tuple(float(m) for m in image_mean)
        self.image_std = tuple(float(s) for s in image_std)
        self.size_divisible = int(size_divisible)
        self.fixed_size = tuple(fixed_size) if fixed_size is not None else None
        self.out_dtype = np.dtype(out_dtype)          # torch returns f32
        # bf16 matmul inputs (f32 accumulate): ~1e-2 abs error after the folded
        # normalize; pass jnp.float32 for torch-exact resize at lower MXU rate.
        self.compute_dtype = np.dtype(compute_dtype)

    def _output_size(self, h, w):
        # Mirrors _resize_image_and_masks (float32 scale, .item(), output size
        # floor(in * scale) via recompute_scale_factor=True).
        if self.fixed_size is not None:
            return int(self.fixed_size[1]), int(self.fixed_size[0])
        min_dim = np.float32(min(h, w))
        max_dim = np.float32(max(h, w))
        scale = float(np.minimum(np.float32(float(self.min_size[-1])) / min_dim,
                                 np.float32(float(self.max_size)) / max_dim))
        return int(math.floor(h * scale)), int(math.floor(w * scale))

    def __call__(self, images):
        for img in images:
            if img.ndim != 3:
                raise ValueError(
                    "images is expected to be a list of 3d tensors of shape "
                    f"[C, H, W], got {img.shape}")
            if not jnp.issubdtype(img.dtype, jnp.floating):
                raise TypeError(
                    "Expected input images to be of floating type (in range "
                    f"[0, 1]), but found type {img.dtype} instead")

        image_sizes = [self._output_size(im.shape[1], im.shape[2])
                       for im in images]

        # batch_images: max over axes, H/W rounded up to size_divisible.
        max_c = max(int(im.shape[0]) for im in images)
        stride = float(self.size_divisible)
        pad_h = int(math.ceil(max(s[0] for s in image_sizes) / stride) * stride)
        pad_w = int(math.ceil(max(s[1] for s in image_sizes) / stride) * stride)

        sigs = tuple(
            (int(im.shape[0]), int(im.shape[1]), int(im.shape[2]), oh, ow)
            for im, (oh, ow) in zip(images, image_sizes))
        batch_fn = _get_batch_fn(sigs, max_c, pad_h, pad_w,
                                 self.image_mean, self.image_std,
                                 self.out_dtype, self.compute_dtype)
        batched = batch_fn(*images)
        # TODO(synk): postprocess / resize_boxes / paste_masks_in_image are
        # host-side glue outside forward() and are intentionally not implemented.
        return batched, image_sizes


# ----------------------------------------------------------------------------
# Demo / self-test
# ----------------------------------------------------------------------------
if __name__ == "__main__":
    key = jax.random.PRNGKey(0)
    k1, k2, k3 = jax.random.split(key, 3)
    # Small CHW images in [0, 1] with different sizes (list-of-images input).
    img1 = jax.random.uniform(k1, (3, 20, 30), dtype=jnp.float32)
    img2 = jax.random.uniform(k2, (3, 24, 16), dtype=jnp.float32)
    img3 = jax.random.uniform(k3, (3, 20, 30), dtype=jnp.float32)

    transform = GeneralizedRCNNTransformPallas(
        min_size=32, max_size=48,
        image_mean=[0.485, 0.456, 0.406],
        image_std=[0.229, 0.224, 0.225],
        size_divisible=32)

    # Pure-JAX f32 reference (normalize -> bilinear resize -> zero pad) using
    # the same interpolation matrices.
    def ref_one(img, oh, ow, ph, pw, mean, std):
        c, h, w = img.shape
        wy = jnp.asarray(_bilinear_weight_matrix(h, oh, ph))
        wx = jnp.asarray(_bilinear_weight_matrix(w, ow, pw))
        norm = (img - mean.reshape(c, 1, 1)) / std.reshape(c, 1, 1)
        return jnp.einsum('ph,chw,qw->cpq', wy, norm, wx)

    mean = jnp.asarray(transform.image_mean, jnp.float32)
    std = jnp.asarray(transform.image_std, jnp.float32)

    # ---- mixed-shape batch: two runs (exercises the aliased-canvas path) ----
    batched, image_sizes = transform([img1, img2])
    batched = jax.block_until_ready(batched)

    ph, pw = batched.shape[2], batched.shape[3]
    ref = jnp.stack([
        ref_one(img1, image_sizes[0][0], image_sizes[0][1], ph, pw, mean, std),
        ref_one(img2, image_sizes[1][0], image_sizes[1][1], ph, pw, mean, std),
    ])
    got = np.asarray(batched)
    # bf16 matmuls w/ f32 accumulation vs f32 reference -> slightly looser tol.
    np.testing.assert_allclose(got, np.asarray(ref), rtol=4e-2, atol=4e-2)

    # batch_images semantics: padding region must be exactly zero.
    for i, (oh, ow) in enumerate(image_sizes):
        assert np.all(got[i, :, oh:, :] == 0.0)
        assert np.all(got[i, :, :, ow:] == 0.0)
    assert batched.shape == (2, 3, 64, 64)
    assert image_sizes == [(32, 48), (48, 32)]

    # ---- same-shape batch: one grouped run (exercises the image-axis grid) ----
    batched2, sizes2 = transform([img1, img3])
    batched2 = jax.block_until_ready(batched2)
    ph2, pw2 = batched2.shape[2], batched2.shape[3]
    ref2 = jnp.stack([
        ref_one(img1, sizes2[0][0], sizes2[0][1], ph2, pw2, mean, std),
        ref_one(img3, sizes2[1][0], sizes2[1][1], ph2, pw2, mean, std),
    ])
    np.testing.assert_allclose(np.asarray(batched2), np.asarray(ref2),
                               rtol=4e-2, atol=4e-2)

    print("KERNEL_OK")
</pallas_src>

<mosaic_0001>
module attributes {stable_mosaic.version = 11 : i64} {
  func.func @kernel(%arg0: i32, %arg1: i32, %arg2: memref<1x3x24x16xbf16, #tpu.memory_space<vmem>>, %arg3: memref<64x24xbf16, #tpu.memory_space<vmem>>, %arg4: memref<16x64xbf16, #tpu.memory_space<vmem>>, %arg5: memref<2x3x64x64xf32, #tpu.memory_space<any>>, %arg6: memref<1x3x64x64xf32, #tpu.memory_space<vmem>>) attributes {dimension_semantics = [#tpu.dimension_semantics<parallel>, #tpu.dimension_semantics<parallel>], iteration_bounds = array<i64: 1, 1>, scalar_prefetch = 0 : i64, scratch_operands = 0 : i64, tpu.core_type = #tpu.core_type<tc>, window_params = [{transform_indices = @transform_0, window_bounds = array<i64: 1, 3, 24, 16>}, {transform_indices = @transform_1, window_bounds = array<i64: 64, 24>}, {pipeline_mode = #tpu.pipeline_mode<synchronous>, transform_indices = @transform_2, window_bounds = array<i64: 16, 64>}, {}, {transform_indices = @transform_4, window_bounds = array<i64: 1, 3, 64, 64>}]} {
    %c0 = arith.constant 0 : index
    %c0_0 = arith.constant 0 : index
    %0 = vector.load %arg3[%c0, %c0_0] : memref<64x24xbf16, #tpu.memory_space<vmem>>, vector<64x24xbf16>
    %c0_1 = arith.constant 0 : index
    %c0_2 = arith.constant 0 : index
    %1 = vector.load %arg4[%c0_1, %c0_2] : memref<16x64xbf16, #tpu.memory_space<vmem>>, vector<16x64xbf16>
    %c64_i32 = arith.constant 64 : i32
    %2 = arith.muli %arg1, %c64_i32 : i32
    %3 = tpu.iota {dimensions = array<i32: 0>} : vector<64x64xi32>
    %4 = vector.broadcast %2 : i32 to vector<64x64xi32>
    %5 = arith.addi %3, %4 : vector<64x64xi32>
    %6 = tpu.iota {dimensions = array<i32: 1>} : vector<64x64xi32>
    %c48_i32 = arith.constant 48 : i32
    %7 = vector.broadcast %c48_i32 : i32 to vector<64x64xi32>
    %8 = arith.cmpi slt, %5, %7 : vector<64x64xi32>
    %c32_i32 = arith.constant 32 : i32
    %9 = vector.broadcast %c32_i32 : i32 to vector<64x64xi32>
    %10 = arith.cmpi slt, %6, %9 : vector<64x64xi32>
    %11 = arith.andi %8, %10 : vector<64x64xi1>
    %12 = arith.extui %11 : vector<64x64xi1> to vector<64x64xi32>
    %13 = arith.sitofp %12 : vector<64x64xi32> to vector<64x64xf32>
    %c0_3 = arith.constant 0 : index
    %c0_4 = arith.constant 0 : index
    %c0_5 = arith.constant 0 : index
    %c0_6 = arith.constant 0 : index
    %14 = vector.load %arg2[%c0_3, %c0_4, %c0_5, %c0_6] : memref<1x3x24x16xbf16, #tpu.memory_space<vmem>>, vector<1x1x24x16xbf16>
    %15 = vector.shape_cast %14 : vector<1x1x24x16xbf16> to vector<24x16xbf16>
    %cst = arith.constant dense<0.000000e+00> : vector<64x16xf32>
    %16 = tpu.matmul %0, %15, %cst {dimension_numbers = #tpu.dot_dimension_numbers<[1], [0], [0], [1], [0, 0, 1, 1], [], []>} : vector<64x24xbf16>, vector<24x16xbf16>, vector<64x16xf32> -> vector<64x16xf32>
    %17 = arith.truncf %16 : vector<64x16xf32> to vector<64x16xbf16>
    %cst_7 = arith.constant dense<0.000000e+00> : vector<64x64xf32>
    %18 = tpu.matmul %17, %1, %cst_7 {dimension_numbers = #tpu.dot_dimension_numbers<[1], [0], [0], [1], [0, 0, 1, 1], [], []>} : vector<64x16xbf16>, vector<16x64xbf16>, vector<64x64xf32> -> vector<64x64xf32>
    %cst_8 = arith.constant 4.36681223 : f32
    %19 = vector.broadcast %cst_8 : f32 to vector<64x64xf32>
    %20 = arith.mulf %19, %18 : vector<64x64xf32>
    %cst_9 = arith.constant -2.11790395 : f32
    %21 = vector.broadcast %cst_9 : f32 to vector<64x64xf32>
    %22 = arith.mulf %21, %13 : vector<64x64xf32>
    %23 = arith.addf %20, %22 : vector<64x64xf32>
    %c0_10 = arith.constant 0 : index
    %c0_11 = arith.constant 0 : index
    %c0_12 = arith.constant 0 : index
    %c0_13 = arith.constant 0 : index
    %24 = vector.load %arg6[%c0_10, %c0_11, %c0_12, %c0_13] : memref<1x3x64x64xf32, #tpu.memory_space<vmem>>, vector<1x1x64x64xf32>
    %25 = vector.shape_cast %24 : vector<1x1x64x64xf32> to vector<64x64xf32>
    %26 = vector.shape_cast %23 : vector<64x64xf32> to vector<1x1x64x64xf32>
    tpu.vector_store %arg6[%c0_10, %c0_11, %c0_12, %c0_13], %26 {strides = array<i32>} : memref<1x3x64x64xf32, #tpu.memory_space<vmem>>, vector<1x1x64x64xf32>,
    %c0_14 = arith.constant 0 : index
    %c1 = arith.constant 1 : index
    %c0_15 = arith.constant 0 : index
    %c0_16 = arith.constant 0 : index
    %27 = vector.load %arg2[%c0_14, %c1, %c0_15, %c0_16] : memref<1x3x24x16xbf16, #tpu.memory_space<vmem>>, vector<1x1x24x16xbf16>
    %28 = vector.shape_cast %27 : vector<1x1x24x16xbf16> to vector<24x16xbf16>
    %cst_17 = arith.constant dense<0.000000e+00> : vector<64x16xf32>
    %29 = tpu.matmul %0, %28, %cst_17 {dimension_numbers = #tpu.dot_dimension_numbers<[1], [0], [0], [1], [0, 0, 1, 1], [], []>} : vector<64x24xbf16>, vector<24x16xbf16>, vector<64x16xf32> -> vector<64x16xf32>
    %30 = arith.truncf %29 : vector<64x16xf32> to vector<64x16xbf16>
    %cst_18 = arith.constant dense<0.000000e+00> : vector<64x64xf32>
    %31 = tpu.matmul %30, %1, %cst_18 {dimension_numbers = #tpu.dot_dimension_numbers<[1], [0], [0], [1], [0, 0, 1, 1], [], []>} : vector<64x16xbf16>, vector<16x64xbf16>, vector<64x64xf32> -> vector<64x64xf32>
    %cst_19 = arith.constant 4.46428585 : f32
    %32 = vector.broadcast %cst_19 : f32 to vector<64x64xf32>
    %33 = arith.mulf %32, %31 : vector<64x64xf32>
    %cst_20 = arith.constant -2.03571439 : f32
    %34 = vector.broadcast %cst_20 : f32 to vector<64x64xf32>
    %35 = arith.mulf %34, %13 : vector<64x64xf32>
    %36 = arith.addf %33, %35 : vector<64x64xf32>
    %c0_21 = arith.constant 0 : index
    %c1_22 = arith.constant 1 : index
    %c0_23 = arith.constant 0 : index
    %c0_24 = arith.constant 0 : index
    %37 = vector.load %arg6[%c0_21, %c1_22, %c0_23, %c0_24] : memref<1x3x64x64xf32, #tpu.memory_space<vmem>>, vector<1x1x64x64xf32>
    %38 = vector.shape_cast %37 : vector<1x1x64x64xf32> to vector<64x64xf32>
    %39 = vector.shape_cast %36 : vector<64x64xf32> to vector<1x1x64x64xf32>
    tpu.vector_store %arg6[%c0_21, %c1_22, %c0_23, %c0_24], %39 {strides = array<i32>} : memref<1x3x64x64xf32, #tpu.memory_space<vmem>>, vector<1x1x64x64xf32>,
    %c0_25 = arith.constant 0 : index
    %c2 = arith.constant 2 : index
    %c0_26 = arith.constant 0 : index
    %c0_27 = arith.constant 0 : index
    %40 = vector.load %arg2[%c0_25, %c2, %c0_26, %c0_27] : memref<1x3x24x16xbf16, #tpu.memory_space<vmem>>, vector<1x1x24x16xbf16>
    %41 = vector.shape_cast %40 : vector<1x1x24x16xbf16> to vector<24x16xbf16>
    %cst_28 = arith.constant dense<0.000000e+00> : vector<64x16xf32>
    %42 = tpu.matmul %0, %41, %cst_28 {dimension_numbers = #tpu.dot_dimension_numbers<[1], [0], [0], [1], [0, 0, 1, 1], [], []>} : vector<64x24xbf16>, vector<24x16xbf16>, vector<64x16xf32> -> vector<64x16xf32>
    %43 = arith.truncf %42 : vector<64x16xf32> to vector<64x16xbf16>
    %cst_29 = arith.constant dense<0.000000e+00> : vector<64x64xf32>
    %44 = tpu.matmul %43, %1, %cst_29 {dimension_numbers = #tpu.dot_dimension_numbers<[1], [0], [0], [1], [0, 0, 1, 1], [], []>} : vector<64x16xbf16>, vector<16x64xbf16>, vector<64x64xf32> -> vector<64x64xf32>
    %cst_30 = arith.constant 4.44444466 : f32
    %45 = vector.broadcast %cst_30 : f32 to vector<64x64xf32>
    %46 = arith.mulf %45, %44 : vector<64x64xf32>
    %cst_31 = arith.constant -1.80444443 : f32
    %47 = vector.broadcast %cst_31 : f32 to vector<64x64xf32>
    %48 = arith.mulf %47, %13 : vector<64x64xf32>
    %49 = arith.addf %46, %48 : vector<64x64xf32>
    %c0_32 = arith.constant 0 : index
    %c2_33 = arith.constant 2 : index
    %c0_34 = arith.constant 0 : index
    %c0_35 = arith.constant 0 : index
    %50 = vector.load %arg6[%c0_32, %c2_33, %c0_34, %c0_35] : memref<1x3x64x64xf32, #tpu.memory_space<vmem>>, vector<1x1x64x64xf32>
    %51 = vector.shape_cast %50 : vector<1x1x64x64xf32> to vector<64x64xf32>
    %52 = vector.shape_cast %49 : vector<64x64xf32> to vector<1x1x64x64xf32>
    tpu.vector_store %arg6[%c0_32, %c2_33, %c0_34, %c0_35], %52 {strides = array<i32>} : memref<1x3x64x64xf32, #tpu.memory_space<vmem>>, vector<1x1x64x64xf32>,
    return
  }
  func.func @transform_0(%arg0: i32, %arg1: i32) -> (i32, i32, i32, i32) {
    %c0_i32 = arith.constant 0 : i32
    %c0_i32_0 = arith.constant 0 : i32
    %c0_i32_1 = arith.constant 0 : i32
    %c0_i32_2 = arith.constant 0 : i32
    return %arg0, %c0_i32, %c0_i32_0, %c0_i32_1 : i32, i32, i32, i32
  }
  func.func @transform_1(%arg0: i32, %arg1: i32) -> (i32, i32) {
    %c0_i32 = arith.constant 0 : i32
    %c0_i32_0 = arith.constant 0 : i32
    return %arg1, %c0_i32 : i32, i32
  }
  func.func @transform_2(%arg0: i32, %arg1: i32) -> (i32, i32) {
    %c0_i32 = arith.constant 0 : i32
    %c0_i32_0 = arith.constant 0 : i32
    %c0_i32_1 = arith.constant 0 : i32
    return %c0_i32, %c0_i32_0 : i32, i32
  }
  func.func @transform_4(%arg0: i32, %arg1: i32) -> (i32, i32, i32, i32) {
    %c1_i32 = arith.constant 1 : i32
    %0 = arith.addi %c1_i32, %arg0 : i32
    %c0_i32 = arith.constant 0 : i32
    %c0_i32_0 = arith.constant 0 : i32
    %c0_i32_1 = arith.constant 0 : i32
    return %0, %c0_i32, %arg1, %c0_i32_0 : i32, i32, i32, i32
  }
}

module attributes {stable_mosaic.version = 11 : i64} {
  func.func @kernel(%arg0: i32, %arg1: i32, %arg2: memref<1x3x20x30xbf16, #tpu.memory_space<vmem>>, %arg3: memref<64x20xbf16, #tpu.memory_space<vmem>>, %arg4: memref<30x64xbf16, #tpu.memory_space<vmem>>, %arg5: memref<1x3x64x64xf32, #tpu.memory_space<vmem>>) attributes {dimension_semantics = [#tpu.dimension_semantics<parallel>, #tpu.dimension_semantics<parallel>], iteration_bounds = array<i64: 1, 1>, scalar_prefetch = 0 : i64, scratch_operands = 0 : i64, tpu.core_type = #tpu.core_type<tc>, window_params = [{transform_indices = @transform_0, window_bounds = array<i64: 1, 3, 20, 30>}, {transform_indices = @transform_1, window_bounds = array<i64: 64, 20>}, {pipeline_mode = #tpu.pipeline_mode<synchronous>, transform_indices = @transform_2, window_bounds = array<i64: 30, 64>}, {transform_indices = @transform_3, window_bounds = array<i64: 1, 3, 64, 64>}]} {
    %c0 = arith.constant 0 : index
    %c0_0 = arith.constant 0 : index
    %0 = vector.load %arg3[%c0, %c0_0] : memref<64x20xbf16, #tpu.memory_space<vmem>>, vector<64x20xbf16>
    %c0_1 = arith.constant 0 : index
    %c0_2 = arith.constant 0 : index
    %1 = vector.load %arg4[%c0_1, %c0_2] : memref<30x64xbf16, #tpu.memory_space<vmem>>, vector<30x64xbf16>
    %c64_i32 = arith.constant 64 : i32
    %2 = arith.muli %arg1, %c64_i32 : i32
    %3 = tpu.iota {dimensions = array<i32: 0>} : vector<64x64xi32>
    %4 = vector.broadcast %2 : i32 to vector<64x64xi32>
    %5 = arith.addi %3, %4 : vector<64x64xi32>
    %6 = tpu.iota {dimensions = array<i32: 1>} : vector<64x64xi32>
    %c32_i32 = arith.constant 32 : i32
    %7 = vector.broadcast %c32_i32 : i32 to vector<64x64xi32>
    %8 = arith.cmpi slt, %5, %7 : vector<64x64xi32>
    %c48_i32 = arith.constant 48 : i32
    %9 = vector.broadcast %c48_i32 : i32 to vector<64x64xi32>
    %10 = arith.cmpi slt, %6, %9 : vector<64x64xi32>
    %11 = arith.andi %8, %10 : vector<64x64xi1>
    %12 = arith.extui %11 : vector<64x64xi1> to vector<64x64xi32>
    %13 = arith.sitofp %12 : vector<64x64xi32> to vector<64x64xf32>
    %c0_3 = arith.constant 0 : index
    %c0_4 = arith.constant 0 : index
    %c0_5 = arith.constant 0 : index
    %c0_6 = arith.constant 0 : index
    %14 = vector.load %arg2[%c0_3, %c0_4, %c0_5, %c0_6] : memref<1x3x20x30xbf16, #tpu.memory_space<vmem>>, vector<1x1x20x30xbf16>
    %15 = vector.shape_cast %14 : vector<1x1x20x30xbf16> to vector<20x30xbf16>
    %cst = arith.constant dense<0.000000e+00> : vector<64x30xf32>
    %16 = tpu.matmul %0, %15, %cst {dimension_numbers = #tpu.dot_dimension_numbers<[1], [0], [0], [1], [0, 0, 1, 1], [], []>} : vector<64x20xbf16>, vector<20x30xbf16>, vector<64x30xf32> -> vector<64x30xf32>
    %17 = arith.truncf %16 : vector<64x30xf32> to vector<64x30xbf16>
    %cst_7 = arith.constant dense<0.000000e+00> : vector<64x64xf32>
    %18 = tpu.matmul %17, %1, %cst_7 {dimension_numbers = #tpu.dot_dimension_numbers<[1], [0], [0], [1], [0, 0, 1, 1], [], []>} : vector<64x30xbf16>, vector<30x64xbf16>, vector<64x64xf32> -> vector<64x64xf32>
    %cst_8 = arith.constant 4.36681223 : f32
    %19 = vector.broadcast %cst_8 : f32 to vector<64x64xf32>
    %20 = arith.mulf %19, %18 : vector<64x64xf32>
    %cst_9 = arith.constant -2.11790395 : f32
    %21 = vector.broadcast %cst_9 : f32 to vector<64x64xf32>
    %22 = arith.mulf %21, %13 : vector<64x64xf32>
    %23 = arith.addf %20, %22 : vector<64x64xf32>
    %c0_10 = arith.constant 0 : index
    %c0_11 = arith.constant 0 : index
    %c0_12 = arith.constant 0 : index
    %c0_13 = arith.constant 0 : index
    %24 = vector.load %arg5[%c0_10, %c0_11, %c0_12, %c0_13] : memref<1x3x64x64xf32, #tpu.memory_space<vmem>>, vector<1x1x64x64xf32>
    %25 = vector.shape_cast %24 : vector<1x1x64x64xf32> to vector<64x64xf32>
    %26 = vector.shape_cast %23 : vector<64x64xf32> to vector<1x1x64x64xf32>
    tpu.vector_store %arg5[%c0_10, %c0_11, %c0_12, %c0_13], %26 {strides = array<i32>} : memref<1x3x64x64xf32, #tpu.memory_space<vmem>>, vector<1x1x64x64xf32>,
    %c0_14 = arith.constant 0 : index
    %c1 = arith.constant 1 : index
    %c0_15 = arith.constant 0 : index
    %c0_16 = arith.constant 0 : index
    %27 = vector.load %arg2[%c0_14, %c1, %c0_15, %c0_16] : memref<1x3x20x30xbf16, #tpu.memory_space<vmem>>, vector<1x1x20x30xbf16>
    %28 = vector.shape_cast %27 : vector<1x1x20x30xbf16> to vector<20x30xbf16>
    %cst_17 = arith.constant dense<0.000000e+00> : vector<64x30xf32>
    %29 = tpu.matmul %0, %28, %cst_17 {dimension_numbers = #tpu.dot_dimension_numbers<[1], [0], [0], [1], [0, 0, 1, 1], [], []>} : vector<64x20xbf16>, vector<20x30xbf16>, vector<64x30xf32> -> vector<64x30xf32>
    %30 = arith.truncf %29 : vector<64x30xf32> to vector<64x30xbf16>
    %cst_18 = arith.constant dense<0.000000e+00> : vector<64x64xf32>
    %31 = tpu.matmul %30, %1, %cst_18 {dimension_numbers = #tpu.dot_dimension_numbers<[1], [0], [0], [1], [0, 0, 1, 1], [], []>} : vector<64x30xbf16>, vector<30x64xbf16>, vector<64x64xf32> -> vector<64x64xf32>
    %cst_19 = arith.constant 4.46428585 : f32
    %32 = vector.broadcast %cst_19 : f32 to vector<64x64xf32>
    %33 = arith.mulf %32, %31 : vector<64x64xf32>
    %cst_20 = arith.constant -2.03571439 : f32
    %34 = vector.broadcast %cst_20 : f32 to vector<64x64xf32>
    %35 = arith.mulf %34, %13 : vector<64x64xf32>
    %36 = arith.addf %33, %35 : vector<64x64xf32>
    %c0_21 = arith.constant 0 : index
    %c1_22 = arith.constant 1 : index
    %c0_23 = arith.constant 0 : index
    %c0_24 = arith.constant 0 : index
    %37 = vector.load %arg5[%c0_21, %c1_22, %c0_23, %c0_24] : memref<1x3x64x64xf32, #tpu.memory_space<vmem>>, vector<1x1x64x64xf32>
    %38 = vector.shape_cast %37 : vector<1x1x64x64xf32> to vector<64x64xf32>
    %39 = vector.shape_cast %36 : vector<64x64xf32> to vector<1x1x64x64xf32>
    tpu.vector_store %arg5[%c0_21, %c1_22, %c0_23, %c0_24], %39 {strides = array<i32>} : memref<1x3x64x64xf32, #tpu.memory_space<vmem>>, vector<1x1x64x64xf32>,
    %c0_25 = arith.constant 0 : index
    %c2 = arith.constant 2 : index
    %c0_26 = arith.constant 0 : index
    %c0_27 = arith.constant 0 : index
    %40 = vector.load %arg2[%c0_25, %c2, %c0_26, %c0_27] : memref<1x3x20x30xbf16, #tpu.memory_space<vmem>>, vector<1x1x20x30xbf16>
    %41 = vector.shape_cast %40 : vector<1x1x20x30xbf16> to vector<20x30xbf16>
    %cst_28 = arith.constant dense<0.000000e+00> : vector<64x30xf32>
    %42 = tpu.matmul %0, %41, %cst_28 {dimension_numbers = #tpu.dot_dimension_numbers<[1], [0], [0], [1], [0, 0, 1, 1], [], []>} : vector<64x20xbf16>, vector<20x30xbf16>, vector<64x30xf32> -> vector<64x30xf32>
    %43 = arith.truncf %42 : vector<64x30xf32> to vector<64x30xbf16>
    %cst_29 = arith.constant dense<0.000000e+00> : vector<64x64xf32>
    %44 = tpu.matmul %43, %1, %cst_29 {dimension_numbers = #tpu.dot_dimension_numbers<[1], [0], [0], [1], [0, 0, 1, 1], [], []>} : vector<64x30xbf16>, vector<30x64xbf16>, vector<64x64xf32> -> vector<64x64xf32>
    %cst_30 = arith.constant 4.44444466 : f32
    %45 = vector.broadcast %cst_30 : f32 to vector<64x64xf32>
    %46 = arith.mulf %45, %44 : vector<64x64xf32>
    %cst_31 = arith.constant -1.80444443 : f32
    %47 = vector.broadcast %cst_31 : f32 to vector<64x64xf32>
    %48 = arith.mulf %47, %13 : vector<64x64xf32>
    %49 = arith.addf %46, %48 : vector<64x64xf32>
    %c0_32 = arith.constant 0 : index
    %c2_33 = arith.constant 2 : index
    %c0_34 = arith.constant 0 : index
    %c0_35 = arith.constant 0 : index
    %50 = vector.load %arg5[%c0_32, %c2_33, %c0_34, %c0_35] : memref<1x3x64x64xf32, #tpu.memory_space<vmem>>, vector<1x1x64x64xf32>
    %51 = vector.shape_cast %50 : vector<1x1x64x64xf32> to vector<64x64xf32>
    %52 = vector.shape_cast %49 : vector<64x64xf32> to vector<1x1x64x64xf32>
    tpu.vector_store %arg5[%c0_32, %c2_33, %c0_34, %c0_35], %52 {strides = array<i32>} : memref<1x3x64x64xf32, #tpu.memory_space<vmem>>, vector<1x1x64x64xf32>,
    return
  }
  func.func @transform_0(%arg0: i32, %arg1: i32) -> (i32, i32, i32, i32) {
    %c0_i32 = arith.constant 0 : i32
    %c0_i32_0 = arith.constant 0 : i32
    %c0_i32_1 = arith.constant 0 : i32
    %c0_i32_2 = arith.constant 0 : i32
    return %arg0, %c0_i32, %c0_i32_0, %c0_i32_1 : i32, i32, i32, i32
  }
  func.func @transform_1(%arg0: i32, %arg1: i32) -> (i32, i32) {
    %c0_i32 = arith.constant 0 : i32
    %c0_i32_0 = arith.constant 0 : i32
    return %arg1, %c0_i32 : i32, i32
  }
  func.func @transform_2(%arg0: i32, %arg1: i32) -> (i32, i32) {
    %c0_i32 = arith.constant 0 : i32
    %c0_i32_0 = arith.constant 0 : i32
    %c0_i32_1 = arith.constant 0 : i32
    return %c0_i32, %c0_i32_0 : i32, i32
  }
  func.func @transform_3(%arg0: i32, %arg1: i32) -> (i32, i32, i32, i32) {
    %c0_i32 = arith.constant 0 : i32
    %0 = arith.addi %c0_i32, %arg0 : i32
    %c0_i32_0 = arith.constant 0 : i32
    %c0_i32_1 = arith.constant 0 : i32
    %c0_i32_2 = arith.constant 0 : i32
    return %0, %c0_i32_0, %arg1, %c0_i32_1 : i32, i32, i32, i32
  }
}

</mosaic_0001>

<bundles_post_ra>
// kernel: batch_fn.3
= control target key start
LH: loop header
LB: loop body
LE: loop exit
PB: predicated region body
PF: predicated region fallthrough
CT: control target
= control target key end

     0   :  { %vm127_vm0 = vcmask 1043456   ;;  %vm114_vm1 = vcmask 195584   ;;  %s1057_s0 = inlined_call_operand.vmem [shape: bf16[1,3,24,16], index: 0, kind: input, shape index: {}]   ;;  %s1058_s1 = inlined_call_operand.vmem [shape: bf16[64,24], index: 1, kind: input, shape index: {}]   ;;  %s1059_s2 = inlined_call_operand.vmem [shape: bf16[16,64], index: 2, kind: input, shape index: {}]   ;;  %s1060_s3 = inlined_call_operand.hbm [shape: f32[2,3,64,64], index: 3, kind: input, shape index: {}, may-alias: {3,4}]   ;;  %s1061_s4 = inlined_call_operand.hbm [shape: f32[2,3,64,64], index: 4, kind: output, shape index: {}, may-alias: {3,4}]  }
   0x1   :  { %v881_v0 = vld [vmem:[%s1057_s0] sm:$0xff]   ;;  %v882_v1 = vld [vmem:[%s1057_s0 + $0x8] ss:$0 sps:$4 sm:$0xff]   ;;  %v885_v5 = vld [vmem:[%s1058_s1 + $0x10] sm:$0xff]  }
   0x2   :  { %808 = vmatprep.subr.bf16.mxu0 %v881_v0  ;;  %v883_v2 = vld [vmem:[%s1058_s1] sm:$0xff]   ;;  %v129_v3 = vsel %vm127_vm0, %v882_v1, 0  ;;  %v884_v4 = vld [vmem:[%s1058_s1 + $0x8] sm:$0xff]  }
   0x3   :  { %809 = vmatpush3.bf16.msra.mxu0 %v881_v0  ;;  %812 = vmatprep.mubr.msk.bf16.mxu0 %vm114_vm1, %v883_v2 }
   0x4   :  { %874 = vmatprep.subr.msk.bf16.mxu0 %vm127_vm0, %v882_v1 }
   0x7   :  { %811 = vmatpush3.bf16.msra.mxu0 %v129_v3 }
   0x8   :  { %9 = vsyncpa [#allocation3], 0  ;;  %v886_v6 = vld [vmem:[%s1058_s1 + $0x18] sm:$0xff]   ;;  %v975_v7 = vld [vmem:[%s1059_s2] sm:$0xff]   ;;  %vm206_vm2 = vcmask 130048   ;;  %v47_v26 = vlaneseq  ;;  %v919_v28 = vmov 0.0  }
   0x9   :  { %820 = vmatprep.subr.bf16.mxu1 %v975_v7  ;;  %842 = vmatprep.subr.bf16.mxu0 %v975_v7  ;;  %v888_v8 = vld [vmem:[%s1057_s0 + $0xc] sm:$0xff]   ;;  %v889_v15 = vld [vmem:[%s1057_s0 + $0x14] ss:$0 sps:$4 sm:$0xff]   ;;  %v890_v19 = vld [vmem:[%s1057_s0 + $0x18] sm:$0xff]   ;;  %vm308_vm4 = vcmask 523264   ;;  %s727_s11 = scalar_lea.hbm %s1061_s4, 3072 }
   0xa   :  { %813 = vmatmul.mubr.msk.bf16.vlgmr.msra.gmra.mrb[0].mxu0 %vm114_vm1, %v884_v4  ;;  %821 = vmatpush3.bf16.msra.mxu1 %v975_v7  ;;  %v331_v18 = vsel %vm127_vm0, %v889_v15, 0  ;;  %v891_v24 = vld [vmem:[%s1057_s0 + $0x20] ss:$0 sps:$4 sm:$0xff]   ;;  %v48_v27 = vand.u32 127, %v47_v26  ;;  %s920_s0 = smov [#allocation2]  }
   0xb   :  { %816 = vmatprep.mubr.msk.bf16.mxu0 %vm114_vm1, %v885_v5  ;;  %843 = vmatpush3.bf16.msra.mxu0 %v975_v7  ;;  %v526_v25 = vsel %vm127_vm0, %v891_v24, 0  ;;  %s716_s8 = sshll.u32 %s920_s0, 4  ;;  %s717_s8 = int_to_ptr.vmem [resolvable:$true] %s716_s8 }
   0xc   :  { %864 = vmatprep.subr.bf16.mxu0 %v975_v7  ;;  %830 = vmatprep.subr.bf16.mxu1 %v888_v8  ;;  %vm57_vm3 = vcmp.lt.s32.totalorder %v48_v27, 32  ;;  %s892_s12 = scalar_lea.vmem %s717_s8, 3072  ;;  %p897_p1 = scmp.lt.s32.totalorder %s717_s8, %s717_s8 }
   0xd   :  { %v1010_v29 = vsel %vm57_vm3, 1.0, %v919_v28  ;;  %p893_p0 = scmp.ne.s32.totalorder %s717_s8, %s892_s12  ;;  %p898_p2 = scmp.lt.s32.totalorder %s892_s12, %s892_s12 }
   0xe   :  { %v292_v30 = vmul.f32 -2.117904, %v1010_v29 }
   0xf   :  { %p899_p3 = por %p898_p2, %p897_p1 }
  0x11   :  { %p900_p4 = pnand %p899_p3, %p893_p0 }
  0x12   :  { %817 = vmatmul.mubr.msk.bf16.gmra.mrb[4].mxu0 %vm114_vm1, %v886_v6 }
  0xdd   :  { %v814_v9 = vpop.f32.mrb[0].mxu0 }
  0xde   :  { %v165_v10 = vpop.f32.mrb[1].mxu0 }
  0xdf   :  { %v815_v11 = vpop.f32.mrb[2].mxu0 }
  0xe0   :  { %v197_v12 = vpack.c.bf16 %v815_v11, %v814_v9  ;;  %v168_v13 = vpop.f32.mrb[3].mxu0 }
  0xe1   :  { %v196_v14 = vpack.c.bf16 %v168_v13, %v165_v10  ;;  %v487_v13 = vmul.f32 -2.0357144, %v1010_v29 }
  0xe3   :  { %822 = vmatprep.mubr.msk.bf16.mxu1 %vm206_vm2, %v196_v14 }
  0xe4   :  { %823 = vmatmul.mubr.msk.bf16.vlgmr.msra.gmra.mrb[0].mxu1 %vm206_vm2, %v197_v12 }
  0xe5   :  { %831 = vmatpush3.bf16.msra.mxu1 %v888_v8  ;;  %v818_v16 = vpop.f32.mrb[4].mxu0 }
  0xe6   :  { %v181_v17 = vpop.f32.mrb[5].mxu0  ;;  %875 = vmatprep.subr.msk.bf16.mxu1 %vm127_vm0, %v889_v15 }
  0xe7   :  { %v819_v20 = vpop.f32.mrb[6].mxu0 }
  0xe8   :  { %v199_v21 = vpack.c.bf16 %v819_v20, %v818_v16  ;;  %v184_v22 = vpop.f32.mrb[7].mxu0 }
  0xe9   :  { %v198_v23 = vpack.c.bf16 %v184_v22, %v181_v17  ;;  %833 = vmatpush3.bf16.msra.mxu1 %v331_v18 }
  0xea   :  { %852 = vmatprep.subr.bf16.mxu1 %v890_v19 }
  0xeb   :  { %826 = vmatprep.mubr.msk.bf16.mxu1 %vm206_vm2, %v198_v23 }
  0xec   :  { %827 = vmatmul.mubr.msk.bf16.gmra.mrb[4].mxu1 %vm206_vm2, %v199_v21 }
  0xed   :  { %834 = vmatprep.mubr.msk.bf16.mxu1 %vm114_vm1, %v883_v2 }
  0xf4   :  { %835 = vmatmul.mubr.msk.bf16.vlgmr.msra.gmra.mrb[8].mxu1 %vm114_vm1, %v884_v4 }
  0xf5   :  { %853 = vmatpush3.bf16.msra.mxu1 %v890_v19  ;;  %838 = vmatprep.mubr.msk.bf16.mxu1 %vm114_vm1, %v885_v5 }
  0xf6   :  { %876 = vmatprep.subr.msk.bf16.mxu1 %vm127_vm0, %v891_v24 }
  0xf9   :  { %855 = vmatpush3.bf16.msra.mxu1 %v526_v25 }
  0xfc   :  { %839 = vmatmul.mubr.msk.bf16.gmra.mrb[12].mxu1 %vm114_vm1, %v886_v6 }
  0xfd   :  { %856 = vmatprep.mubr.msk.bf16.mxu1 %vm114_vm1, %v883_v2 }
 0x104   :  { %857 = vmatmul.mubr.msk.bf16.vlgmr.msra.gmra.mrb[16].mxu1 %vm114_vm1, %v884_v4 }
 0x105   :  { %860 = vmatprep.mubr.msk.bf16.mxu1 %vm114_vm1, %v885_v5 }
 0x10c   :  { %861 = vmatmul.mubr.msk.bf16.gmra.mrb[20].mxu1 %vm114_vm1, %v886_v6 }
 0x1b7   :  { %v824_v31 = vpop.f32.mrb[0].mxu1 }
 0x1b8   :  { %v286_v32 = vmul.f32 4.366812, %v824_v31  ;;  %v253_v33 = vpop.f32.mrb[1].mxu1 }
 0x1b9   :  { %v284_v34 = vmul.f32 4.366812, %v253_v33  ;;  %v825_v35 = vpop.f32.mrb[2].mxu1 }
 0x1ba   :  { %v302_v36 = vadd.f32 %v292_v30, %v286_v32  ;;  %v287_v37 = vmul.f32 4.366812, %v825_v35  ;;  %v256_v38 = vpop.f32.mrb[3].mxu1 }
 0x1bb   :  { %v300_v39 = vadd.f32 %v292_v30, %v284_v34  ;;  %v285_v40 = vmul.f32 4.366812, %v256_v38 }
 0x1bc   :  { %311 = vst.msk [vmem:[#allocation2 + $0x10] sm:$0xff] %vm308_vm4, %v302_v36  ;;  %v303_v41 = vadd.f32 %v292_v30, %v287_v37  ;;  %v682_v37 = vmul.f32 -1.8044444, %v1010_v29 }
 0x1bd   :  { %309 = vst.msk [vmem:[#allocation2] sm:$0xff] %vm308_vm4, %v300_v39  ;;  %v301_v42 = vadd.f32 %v292_v30, %v285_v40 }
 0x1be   :  { %312 = vst.msk [vmem:[#allocation2 + $0x18] sm:$0xff] %vm308_vm4, %v303_v41 }
 0x1bf   :  { %310 = vst.msk [vmem:[#allocation2 + $0x8] sm:$0xff] %vm308_vm4, %v301_v42  ;;  %v828_v43 = vpop.f32.mrb[4].mxu1 }
 0x1c0   :  { %v290_v44 = vmul.f32 4.366812, %v828_v43  ;;  %v269_v45 = vpop.f32.mrb[5].mxu1 }
 0x1c1   :  { %v288_v46 = vmul.f32 4.366812, %v269_v45  ;;  %v829_v47 = vpop.f32.mrb[6].mxu1 }
 0x1c2   :  { %315 = vst.msk [vmem:[#allocation2 + $0x30] sm:$0xff] %vm308_vm4, %v290_v44  ;;  %v291_v48 = vmul.f32 4.366812, %v829_v47  ;;  %v272_v49 = vpop.f32.mrb[7].mxu1 }
 0x1c3   :  { %v304_v50 = vadd.f32 %v292_v30, %v288_v46  ;;  %v289_v51 = vmul.f32 4.366812, %v272_v49 }
 0x1c4   :  { %316 = vst.msk [vmem:[#allocation2 + $0x38] sm:$0xff] %vm308_vm4, %v291_v48 }
 0x1c5   :  { %313 = vst.msk [vmem:[#allocation2 + $0x20] sm:$0xff] %vm308_vm4, %v304_v50  ;;  %v305_v52 = vadd.f32 %v292_v30, %v289_v51 }
 0x1c7   :  { %314 = vst.msk [vmem:[#allocation2 + $0x28] sm:$0xff] %vm308_vm4, %v305_v52  ;;  %v836_v53 = vpop.f32.mrb[8].mxu1 }
 0x1c8   :  { %v367_v54 = vpop.f32.mrb[9].mxu1 }
 0x1c9   :  { %v837_v55 = vpop.f32.mrb[10].mxu1 }
 0x1ca   :  { %v399_v56 = vpack.c.bf16 %v837_v55, %v836_v53  ;;  %v370_v57 = vpop.f32.mrb[11].mxu1 }
 0x1cb   :  { %v398_v58 = vpack.c.bf16 %v370_v57, %v367_v54 }
 0x1cd   :  { %844 = vmatprep.mubr.msk.bf16.mxu0 %vm206_vm2, %v398_v58 }
 0x1ce   :  { %845 = vmatmul.mubr.msk.bf16.vlgmr.msra.gmra.mrb[8].mxu0 %vm206_vm2, %v399_v56 }
 0x1cf   :  { %865 = vmatpush3.bf16.msra.mxu0 %v975_v7  ;;  %v840_v59 = vpop.f32.mrb[12].mxu1 }
 0x1d0   :  { %v383_v60 = vpop.f32.mrb[13].mxu1 }
 0x1d1   :  { %v841_v61 = vpop.f32.mrb[14].mxu1 }
 0x1d2   :  { %v401_v62 = vpack.c.bf16 %v841_v61, %v840_v59  ;;  %v386_v63 = vpop.f32.mrb[15].mxu1 }
 0x1d3   :  { %v400_v0 = vpack.c.bf16 %v386_v63, %v383_v60 }
 0x1d5   :  { %848 = vmatprep.mubr.msk.bf16.mxu0 %vm206_vm2, %v400_v0 }
 0x1d6   :  { %849 = vmatmul.mubr.msk.bf16.gmra.mrb[12].mxu0 %vm206_vm2, %v401_v62 }
 0x1d7   :  { %v858_v1 = vpop.f32.mrb[16].mxu1 }
 0x1d8   :  { %v562_v2 = vpop.f32.mrb[17].mxu1 }
 0x1d9   :  { %v859_v3 = vpop.f32.mrb[18].mxu1 }
 0x1da   :  { %v594_v4 = vpack.c.bf16 %v859_v3, %v858_v1  ;;  %v565_v5 = vpop.f32.mrb[19].mxu1 }
 0x1db   :  { %v593_v6 = vpack.c.bf16 %v565_v5, %v562_v2 }
 0x1dd   :  { %866 = vmatprep.mubr.msk.bf16.mxu0 %vm206_vm2, %v593_v6 }
 0x1de   :  { %867 = vmatmul.mubr.msk.bf16.vlgmr.msra.gmra.mrb[16].mxu0 %vm206_vm2, %v594_v4 }
 0x1df   :  { %v862_v7 = vpop.f32.mrb[20].mxu1 }
 0x1e0   :  { %v578_v8 = vpop.f32.mrb[21].mxu1 }
 0x1e1   :  { %v863_v9 = vpop.f32.mrb[22].mxu1 }
 0x1e2   :  { %v596_v10 = vpack.c.bf16 %v863_v9, %v862_v7  ;;  %v581_v11 = vpop.f32.mrb[23].mxu1 }
 0x1e3   :  { %v595_v12 = vpack.c.bf16 %v581_v11, %v578_v8 }
 0x1e5   :  { %870 = vmatprep.mubr.msk.bf16.mxu0 %vm206_vm2, %v595_v12 }
 0x1e6   :  { %871 = vmatmul.mubr.msk.bf16.gmra.mrb[20].mxu0 %vm206_vm2, %v596_v10 }
 0x2a1   :  { %v846_v14 = vpop.f32.mrb[8].mxu0 }
 0x2a2   :  { %v481_v15 = vmul.f32 4.464286, %v846_v14  ;;  %v448_v16 = vpop.f32.mrb[9].mxu0 }
 0x2a3   :  { %v479_v17 = vmul.f32 4.464286, %v448_v16  ;;  %v847_v18 = vpop.f32.mrb[10].mxu0 }
 0x2a4   :  { %v497_v19 = vadd.f32 %v487_v13, %v481_v15  ;;  %v482_v20 = vmul.f32 4.464286, %v847_v18  ;;  %v451_v21 = vpop.f32.mrb[11].mxu0 }
 0x2a5   :  { %v495_v22 = vadd.f32 %v487_v13, %v479_v17  ;;  %v480_v23 = vmul.f32 4.464286, %v451_v21 }
 0x2a6   :  { %506 = vst.msk [vmem:[#allocation2 + $0x50] sm:$0xff] %vm308_vm4, %v497_v19  ;;  %v498_v24 = vadd.f32 %v487_v13, %v482_v20 }
 0x2a7   :  { %504 = vst.msk [vmem:[#allocation2 + $0x40] sm:$0xff] %vm308_vm4, %v495_v22  ;;  %v496_v25 = vadd.f32 %v487_v13, %v480_v23 }
 0x2a8   :  { %507 = vst.msk [vmem:[#allocation2 + $0x58] sm:$0xff] %vm308_vm4, %v498_v24 }
 0x2a9   :  { %505 = vst.msk [vmem:[#allocation2 + $0x48] sm:$0xff] %vm308_vm4, %v496_v25  ;;  %v850_v26 = vpop.f32.mrb[12].mxu0 }
 0x2aa   :  { %v485_v27 = vmul.f32 4.464286, %v850_v26  ;;  %v464_v28 = vpop.f32.mrb[13].mxu0 }
 0x2ab   :  { %v483_v30 = vmul.f32 4.464286, %v464_v28  ;;  %v851_v31 = vpop.f32.mrb[14].mxu0 }
 0x2ac   :  { %510 = vst.msk [vmem:[#allocation2 + $0x70] sm:$0xff] %vm308_vm4, %v485_v27  ;;  %v486_v32 = vmul.f32 4.464286, %v851_v31  ;;  %v467_v33 = vpop.f32.mrb[15].mxu0 }
 0x2ad   :  { %v499_v34 = vadd.f32 %v487_v13, %v483_v30  ;;  %v484_v35 = vmul.f32 4.464286, %v467_v33 }
 0x2ae   :  { %511 = vst.msk [vmem:[#allocation2 + $0x78] sm:$0xff] %vm308_vm4, %v486_v32 }
 0x2af   :  { %508 = vst.msk [vmem:[#allocation2 + $0x60] sm:$0xff] %vm308_vm4, %v499_v34  ;;  %v500_v36 = vadd.f32 %v487_v13, %v484_v35 }
 0x2b1   :  { %509 = vst.msk [vmem:[#allocation2 + $0x68] sm:$0xff] %vm308_vm4, %v500_v36  ;;  %v868_v38 = vpop.f32.mrb[16].mxu0 }
 0x2b2   :  { %v676_v39 = vmul.f32 4.4444447, %v868_v38  ;;  %v643_v40 = vpop.f32.mrb[17].mxu0 }
 0x2b3   :  { %v674_v41 = vmul.f32 4.4444447, %v643_v40  ;;  %v869_v42 = vpop.f32.mrb[18].mxu0 }
 0x2b4   :  { %v692_v43 = vadd.f32 %v682_v37, %v676_v39  ;;  %v677_v44 = vmul.f32 4.4444447, %v869_v42  ;;  %v646_v45 = vpop.f32.mrb[19].mxu0 }
 0x2b5   :  { %v690_v46 = vadd.f32 %v682_v37, %v674_v41  ;;  %v675_v47 = vmul.f32 4.4444447, %v646_v45 }
 0x2b6   :  { %701 = vst.msk [vmem:[#allocation2 + $0x90] sm:$0xff] %vm308_vm4, %v692_v43  ;;  %v693_v48 = vadd.f32 %v682_v37, %v677_v44 }
 0x2b7   :  { %699 = vst.msk [vmem:[#allocation2 + $0x80] sm:$0xff] %vm308_vm4, %v690_v46  ;;  %v691_v49 = vadd.f32 %v682_v37, %v675_v47 }
 0x2b8   :  { %702 = vst.msk [vmem:[#allocation2 + $0x98] sm:$0xff] %vm308_vm4, %v693_v48 }
 0x2b9   :  { %700 = vst.msk [vmem:[#allocation2 + $0x88] sm:$0xff] %vm308_vm4, %v691_v49  ;;  %v872_v29 = vpop.f32.mrb[20].mxu0 }
 0x2ba   :  { %v680_v50 = vmul.f32 4.4444447, %v872_v29  ;;  %v659_v51 = vpop.f32.mrb[21].mxu0 }
 0x2bb   :  { %v678_v52 = vmul.f32 4.4444447, %v659_v51  ;;  %v873_v53 = vpop.f32.mrb[22].mxu0 }
 0x2bc   :  { %705 = vst.msk [vmem:[#allocation2 + $0xb0] sm:$0xff] %vm308_vm4, %v680_v50  ;;  %v681_v54 = vmul.f32 4.4444447, %v873_v53  ;;  %v662_v55 = vpop.f32.mrb[23].mxu0 }
 0x2bd   :  { %v694_v56 = vadd.f32 %v682_v37, %v678_v52  ;;  %v679_v57 = vmul.f32 4.4444447, %v662_v55 }
 0x2be   :  { %706 = vst.msk [vmem:[#allocation2 + $0xb8] sm:$0xff] %vm308_vm4, %v681_v54 }
 0x2bf   :  { %703 = vst.msk [vmem:[#allocation2 + $0xa0] sm:$0xff] %vm308_vm4, %v694_v56  ;;  %v695_v58 = vadd.f32 %v682_v37, %v679_v57 }
 0x2c1   :  { %704 = vst.msk [vmem:[#allocation2 + $0xa8] sm:$0xff] %vm308_vm4, %v695_v58 }
 0x2c2   :  { %903 = shalt.err (!%p900_p4)
}
 0x2c3   :  { %s916_s15 = scalar_lea.hbm %s1061_s4, 6144  ;;  %p907_p6 = scmp.lt.u32.totalorder %s727_s11, %s1061_s4 }
 0x2c4   :  { %p905_p5 = scmp.ne.s32.totalorder %s727_s11, %s916_s15  ;;  %p908_p7 = scmp.lt.u32.totalorder %s916_s15, %s916_s15 }
 0x2c5   :  { %p910_p9 = scmp.lt.u32.totalorder %s916_s15, %s727_s11 }
 0x2c6   :  { %p909_p8 = por %p908_p7, %p907_p6 }
 0x2c8   :  { %p911_p10 = por %p910_p9, %p909_p8 }
 0x2ca   :  { %p912_p11 = pnand %p911_p10, %p905_p5 }
 0x2cc   :  { %915 = shalt.err (!%p912_p11)
}
 0x2cd   :  { %s921_s18 = smov 128   ;;  %s922_s19 = smov 8  }
 0x2ce   :  { %722 = dma.vmem_to_hbm [thread:$0]  %s717_s8, 3072, %s727_s11, [#allocation3], %s921_s18, %s921_s18, %s922_s19  }
 0x2cf   :  { %917 = dma.done.wait [#allocation3], 3072  }
 0x2d0   :  { %918 = vsyncadd [#allocation3], 4294964224 }
 0x2d1   :  { %726 = vsyncpa [#allocation3], 1 }

// kernel: batch_fn.2
= control target key start
LH: loop header
LB: loop body
LE: loop exit
PB: predicated region body
PF: predicated region fallthrough
CT: control target
= control target key end

     0   :  { %vm127_vm0 = vcmask 1041408   ;;  %vm114_vm1 = vcmask 162816   ;;  %s1065_s0 = inlined_call_operand.vmem [shape: bf16[1,3,20,30], index: 0, kind: input, shape index: {}]   ;;  %s1066_s1 = inlined_call_operand.vmem [shape: bf16[64,20], index: 1, kind: input, shape index: {}]   ;;  %s1067_s2 = inlined_call_operand.vmem [shape: bf16[30,64], index: 2, kind: input, shape index: {}]   ;;  %s1068_s3 = inlined_call_operand.hbm [shape: f32[2,3,64,64], index: 3, kind: output, shape index: {}]  }
   0x1   :  { %v896_v0 = vld [vmem:[%s1065_s0] sm:$0xff]   ;;  %v897_v1 = vld [vmem:[%s1065_s0 + $0x8] ss:$0 sps:$4 sm:$0x33]   ;;  %v900_v4 = vld [vmem:[%s1065_s0 + $0xc] sm:$0xff]  }
   0x2   :  { %v898_v2 = vld [vmem:[%s1066_s1] sm:$0xff]   ;;  %814 = vmatprep.subr.bf16.mxu0 %v896_v0  ;;  %v129_v3 = vsel %vm127_vm0, %v897_v1, 0  ;;  %v899_v5 = vld [vmem:[%s1066_s1 + $0x8] sm:$0xff]   ;;  %v901_v6 = vld [vmem:[%s1066_s1 + $0x10] sm:$0xff]  }
   0x3   :  { %815 = vmatpush3.bf16.msra.mxu0 %v896_v0  ;;  %818 = vmatprep.mubr.msk.bf16.mxu0 %vm114_vm1, %v898_v2  ;;  %v903_v7 = vld [vmem:[%s1065_s0 + $0x14] ss:$0 sps:$4 sm:$0x33]   ;;  %v906_v8 = vld [vmem:[%s1067_s2] sm:$0xff]  }
   0x4   :  { %886 = vmatprep.subr.msk.bf16.mxu0 %vm127_vm0, %v897_v1 }
   0x7   :  { %817 = vmatpush3.bf16.msra.mxu0 %v129_v3 }
   0x8   :  { %838 = vmatprep.subr.bf16.mxu0 %v900_v4 }
   0xa   :  { %819 = vmatmul.mubr.msk.bf16.vlgmr.msra.gmra.mrb[0].mxu0 %vm114_vm1, %v899_v5 }
   0xb   :  { %839 = vmatpush3.bf16.msra.mxu0 %v900_v4  ;;  %822 = vmatprep.mubr.msk.bf16.mxu0 %vm114_vm1, %v901_v6 }
   0xc   :  { %8 = vsyncpa [#allocation3], 0  ;;  %888 = vmatprep.subr.msk.bf16.mxu0 %vm127_vm0, %v903_v7  ;;  %v340_v9 = vsel %vm127_vm0, %v903_v7, 0  ;;  %v904_v10 = vld [vmem:[%s1065_s0 + $0x18] sm:$0xff]   ;;  %826 = vmatprep.subr.bf16.mxu1 %v906_v8  ;;  %v907_v14 = vld [vmem:[%s1067_s2 + $0x8] sm:$0x7f]   ;;  %v47_v52 = vlaneseq }
   0xd   :  { %827 = vmatpush3.bf16.msra.mxu1 %v906_v8  ;;  %v902_v11 = vld [vmem:[%s1066_s1 + $0x18] sm:$0xff]   ;;  %v905_v12 = vld [vmem:[%s1065_s0 + $0x20] ss:$0 sps:$4 sm:$0x33]   ;;  %vm224_vm2 = vcmask 1046528   ;;  %vm211_vm3 = vcmask 244736  }
   0xe   :  { %v535_v13 = vsel %vm127_vm0, %v905_v12, 0  ;;  %887 = vmatprep.subr.msk.bf16.mxu1 %vm224_vm2, %v907_v14  ;;  %v226_v15 = vsel %vm224_vm2, %v907_v14, 0  ;;  %v48_v53 = vand.u32 127, %v47_v52  ;;  %v932_v54 = vmov 0.0   ;;  %s933_s2 = smov [#allocation2]  }
   0xf   :  { %841 = vmatpush3.bf16.msra.mxu0 %v340_v9  ;;  %vm317_vm5 = vcmask 523264   ;;  %s721_s7 = sshll.u32 %s933_s2, 4  ;;  %s722_s7 = int_to_ptr.vmem [resolvable:$true] %s721_s7 }
  0x10   :  { %862 = vmatprep.subr.bf16.mxu0 %v904_v10  ;;  %vm57_vm4 = vcmp.lt.s32.totalorder %v48_v53, 48  ;;  %s908_s8 = scalar_lea.vmem %s722_s7, 3072  ;;  %p913_p1 = scmp.lt.s32.totalorder %s722_s7, %s722_s7 }
  0x11   :  { %829 = vmatpush3.bf16.msra.mxu1 %v226_v15  ;;  %v732_v55 = vsel %vm57_vm4, 1.0, %v932_v54  ;;  %p909_p0 = scmp.ne.s32.totalorder %s722_s7, %s908_s8  ;;  %p914_p2 = scmp.lt.s32.totalorder %s908_s8, %s908_s8 }
  0x12   :  { %823 = vmatmul.mubr.msk.bf16.gmra.mrb[4].mxu0 %vm114_vm1, %v902_v11  ;;  %850 = vmatprep.subr.bf16.mxu1 %v906_v8  ;;  %v301_v56 = vmul.f32 -2.117904, %v732_v55 }
  0x13   :  { %842 = vmatprep.mubr.msk.bf16.mxu0 %vm114_vm1, %v898_v2  ;;  %p915_p3 = por %p914_p2, %p913_p1 }
  0x15   :  { %p916_p4 = pnand %p915_p3, %p909_p0 }
  0x1a   :  { %843 = vmatmul.mubr.msk.bf16.vlgmr.msra.gmra.mrb[8].mxu0 %vm114_vm1, %v899_v5 }
  0x1b   :  { %863 = vmatpush3.bf16.msra.mxu0 %v904_v10  ;;  %846 = vmatprep.mubr.msk.bf16.mxu0 %vm114_vm1, %v901_v6 }
  0x1c   :  { %890 = vmatprep.subr.msk.bf16.mxu0 %vm127_vm0, %v905_v12 }
  0x1f   :  { %865 = vmatpush3.bf16.msra.mxu0 %v535_v13  ;;  %v496_v13 = vmul.f32 -2.0357144, %v732_v55 }
  0x22   :  { %847 = vmatmul.mubr.msk.bf16.gmra.mrb[12].mxu0 %vm114_vm1, %v902_v11 }
  0x23   :  { %866 = vmatprep.mubr.msk.bf16.mxu0 %vm114_vm1, %v898_v2 }
  0x2a   :  { %867 = vmatmul.mubr.msk.bf16.vlgmr.msra.gmra.mrb[16].mxu0 %vm114_vm1, %v899_v5 }
  0x2b   :  { %870 = vmatprep.mubr.msk.bf16.mxu0 %vm114_vm1, %v901_v6 }
  0x32   :  { %871 = vmatmul.mubr.msk.bf16.gmra.mrb[20].mxu0 %vm114_vm1, %v902_v11 }
  0xdd   :  { %v820_v16 = vpop.f32.mrb[0].mxu0 }
  0xde   :  { %v165_v17 = vpop.f32.mrb[1].mxu0 }
  0xdf   :  { %v821_v18 = vpop.f32.mrb[2].mxu0 }
  0xe0   :  { %v197_v19 = vpack.c.bf16 %v821_v18, %v820_v16  ;;  %v168_v20 = vpop.f32.mrb[3].mxu0 }
  0xe1   :  { %v196_v21 = vpack.c.bf16 %v168_v20, %v165_v17 }
  0xe3   :  { %830 = vmatprep.mubr.msk.bf16.mxu1 %vm211_vm3, %v196_v21 }
  0xe4   :  { %831 = vmatmul.mubr.msk.bf16.vlgmr.msra.gmra.mrb[0].mxu1 %vm211_vm3, %v197_v19 }
  0xe5   :  { %v824_v22 = vpop.f32.mrb[4].mxu0  ;;  %851 = vmatpush3.bf16.msra.mxu1 %v906_v8 }
  0xe6   :  { %v181_v23 = vpop.f32.mrb[5].mxu0  ;;  %889 = vmatprep.subr.msk.bf16.mxu1 %vm224_vm2, %v907_v14 }
  0xe7   :  { %v825_v24 = vpop.f32.mrb[6].mxu0 }
  0xe8   :  { %v199_v25 = vpack.c.bf16 %v825_v24, %v824_v22  ;;  %v184_v26 = vpop.f32.mrb[7].mxu0 }
  0xe9   :  { %v198_v27 = vpack.c.bf16 %v184_v26, %v181_v23  ;;  %853 = vmatpush3.bf16.msra.mxu1 %v226_v15 }
  0xea   :  { %874 = vmatprep.subr.bf16.mxu1 %v906_v8 }
  0xeb   :  { %834 = vmatprep.mubr.msk.bf16.mxu1 %vm211_vm3, %v198_v27 }
  0xec   :  { %835 = vmatmul.mubr.msk.bf16.gmra.mrb[4].mxu1 %vm211_vm3, %v199_v25 }
  0xed   :  { %v844_v28 = vpop.f32.mrb[8].mxu0 }
  0xee   :  { %v376_v29 = vpop.f32.mrb[9].mxu0 }
  0xef   :  { %v845_v30 = vpop.f32.mrb[10].mxu0 }
  0xf0   :  { %v408_v31 = vpack.c.bf16 %v845_v30, %v844_v28  ;;  %v379_v32 = vpop.f32.mrb[11].mxu0 }
  0xf1   :  { %v407_v33 = vpack.c.bf16 %v379_v32, %v376_v29 }
  0xf3   :  { %854 = vmatprep.mubr.msk.bf16.mxu1 %vm211_vm3, %v407_v33 }
  0xf4   :  { %855 = vmatmul.mubr.msk.bf16.vlgmr.msra.gmra.mrb[8].mxu1 %vm211_vm3, %v408_v31 }
  0xf5   :  { %v848_v34 = vpop.f32.mrb[12].mxu0  ;;  %875 = vmatpush3.bf16.msra.mxu1 %v906_v8 }
  0xf6   :  { %v392_v35 = vpop.f32.mrb[13].mxu0  ;;  %891 = vmatprep.subr.msk.bf16.mxu1 %vm224_vm2, %v907_v14 }
  0xf7   :  { %v849_v36 = vpop.f32.mrb[14].mxu0 }
  0xf8   :  { %v410_v37 = vpack.c.bf16 %v849_v36, %v848_v34  ;;  %v395_v38 = vpop.f32.mrb[15].mxu0  ;;  %v691_v34 = vmul.f32 -1.8044444, %v732_v55 }
  0xf9   :  { %v409_v39 = vpack.c.bf16 %v395_v38, %v392_v35  ;;  %877 = vmatpush3.bf16.msra.mxu1 %v226_v15 }
  0xfb   :  { %858 = vmatprep.mubr.msk.bf16.mxu1 %vm211_vm3, %v409_v39 }
  0xfc   :  { %859 = vmatmul.mubr.msk.bf16.gmra.mrb[12].mxu1 %vm211_vm3, %v410_v37 }
  0xfd   :  { %v868_v40 = vpop.f32.mrb[16].mxu0 }
  0xfe   :  { %v571_v41 = vpop.f32.mrb[17].mxu0 }
  0xff   :  { %v869_v42 = vpop.f32.mrb[18].mxu0 }
 0x100   :  { %v603_v43 = vpack.c.bf16 %v869_v42, %v868_v40  ;;  %v574_v44 = vpop.f32.mrb[19].mxu0 }
 0x101   :  { %v602_v45 = vpack.c.bf16 %v574_v44, %v571_v41 }
 0x103   :  { %878 = vmatprep.mubr.msk.bf16.mxu1 %vm211_vm3, %v602_v45 }
 0x104   :  { %879 = vmatmul.mubr.msk.bf16.vlgmr.msra.gmra.mrb[16].mxu1 %vm211_vm3, %v603_v43 }
 0x105   :  { %v872_v46 = vpop.f32.mrb[20].mxu0 }
 0x106   :  { %v587_v47 = vpop.f32.mrb[21].mxu0 }
 0x107   :  { %v873_v48 = vpop.f32.mrb[22].mxu0 }
 0x108   :  { %v605_v49 = vpack.c.bf16 %v873_v48, %v872_v46  ;;  %v590_v50 = vpop.f32.mrb[23].mxu0 }
 0x109   :  { %v604_v51 = vpack.c.bf16 %v590_v50, %v587_v47 }
 0x10b   :  { %882 = vmatprep.mubr.msk.bf16.mxu1 %vm211_vm3, %v604_v51 }
 0x10c   :  { %883 = vmatmul.mubr.msk.bf16.gmra.mrb[20].mxu1 %vm211_vm3, %v605_v49 }
 0x1b7   :  { %v832_v57 = vpop.f32.mrb[0].mxu1 }
 0x1b8   :  { %v295_v58 = vmul.f32 4.366812, %v832_v57  ;;  %v262_v59 = vpop.f32.mrb[1].mxu1 }
 0x1b9   :  { %v293_v60 = vmul.f32 4.366812, %v262_v59  ;;  %v833_v61 = vpop.f32.mrb[2].mxu1 }
 0x1ba   :  { %v311_v62 = vadd.f32 %v301_v56, %v295_v58  ;;  %v296_v63 = vmul.f32 4.366812, %v833_v61  ;;  %v265_v0 = vpop.f32.mrb[3].mxu1 }
 0x1bb   :  { %v309_v1 = vadd.f32 %v301_v56, %v293_v60  ;;  %v294_v2 = vmul.f32 4.366812, %v265_v0 }
 0x1bc   :  { %320 = vst.msk [vmem:[#allocation2 + $0x10] sm:$0xff] %vm317_vm5, %v311_v62  ;;  %v312_v3 = vadd.f32 %v301_v56, %v296_v63 }
 0x1bd   :  { %318 = vst.msk [vmem:[#allocation2] sm:$0xff] %vm317_vm5, %v309_v1  ;;  %v310_v4 = vadd.f32 %v301_v56, %v294_v2 }
 0x1be   :  { %321 = vst.msk [vmem:[#allocation2 + $0x18] sm:$0xff] %vm317_vm5, %v312_v3 }
 0x1bf   :  { %319 = vst.msk [vmem:[#allocation2 + $0x8] sm:$0xff] %vm317_vm5, %v310_v4  ;;  %v836_v5 = vpop.f32.mrb[4].mxu1 }
 0x1c0   :  { %v299_v6 = vmul.f32 4.366812, %v836_v5  ;;  %v278_v7 = vpop.f32.mrb[5].mxu1 }
 0x1c1   :  { %v297_v8 = vmul.f32 4.366812, %v278_v7  ;;  %v837_v9 = vpop.f32.mrb[6].mxu1 }
 0x1c2   :  { %324 = vst.msk [vmem:[#allocation2 + $0x30] sm:$0xff] %vm317_vm5, %v299_v6  ;;  %v300_v10 = vmul.f32 4.366812, %v837_v9  ;;  %v281_v11 = vpop.f32.mrb[7].mxu1 }
 0x1c3   :  { %322 = vst.msk [vmem:[#allocation2 + $0x20] sm:$0xff] %vm317_vm5, %v297_v8  ;;  %v298_v12 = vmul.f32 4.366812, %v281_v11 }
 0x1c4   :  { %325 = vst.msk [vmem:[#allocation2 + $0x38] sm:$0xff] %vm317_vm5, %v300_v10 }
 0x1c5   :  { %323 = vst.msk [vmem:[#allocation2 + $0x28] sm:$0xff] %vm317_vm5, %v298_v12 }
 0x1c7   :  { %v856_v14 = vpop.f32.mrb[8].mxu1 }
 0x1c8   :  { %v490_v15 = vmul.f32 4.464286, %v856_v14  ;;  %v457_v16 = vpop.f32.mrb[9].mxu1 }
 0x1c9   :  { %v488_v17 = vmul.f32 4.464286, %v457_v16  ;;  %v857_v18 = vpop.f32.mrb[10].mxu1 }
 0x1ca   :  { %v506_v19 = vadd.f32 %v496_v13, %v490_v15  ;;  %v491_v20 = vmul.f32 4.464286, %v857_v18  ;;  %v460_v21 = vpop.f32.mrb[11].mxu1 }
 0x1cb   :  { %v504_v22 = vadd.f32 %v496_v13, %v488_v17  ;;  %v489_v23 = vmul.f32 4.464286, %v460_v21 }
 0x1cc   :  { %515 = vst.msk [vmem:[#allocation2 + $0x50] sm:$0xff] %vm317_vm5, %v506_v19  ;;  %v507_v24 = vadd.f32 %v496_v13, %v491_v20 }
 0x1cd   :  { %513 = vst.msk [vmem:[#allocation2 + $0x40] sm:$0xff] %vm317_vm5, %v504_v22  ;;  %v505_v25 = vadd.f32 %v496_v13, %v489_v23 }
 0x1ce   :  { %516 = vst.msk [vmem:[#allocation2 + $0x58] sm:$0xff] %vm317_vm5, %v507_v24 }
 0x1cf   :  { %514 = vst.msk [vmem:[#allocation2 + $0x48] sm:$0xff] %vm317_vm5, %v505_v25  ;;  %v860_v26 = vpop.f32.mrb[12].mxu1 }
 0x1d0   :  { %v494_v27 = vmul.f32 4.464286, %v860_v26  ;;  %v473_v28 = vpop.f32.mrb[13].mxu1 }
 0x1d1   :  { %v492_v29 = vmul.f32 4.464286, %v473_v28  ;;  %v861_v30 = vpop.f32.mrb[14].mxu1 }
 0x1d2   :  { %519 = vst.msk [vmem:[#allocation2 + $0x70] sm:$0xff] %vm317_vm5, %v494_v27  ;;  %v495_v31 = vmul.f32 4.464286, %v861_v30  ;;  %v476_v32 = vpop.f32.mrb[15].mxu1 }
 0x1d3   :  { %517 = vst.msk [vmem:[#allocation2 + $0x60] sm:$0xff] %vm317_vm5, %v492_v29  ;;  %v493_v33 = vmul.f32 4.464286, %v476_v32 }
 0x1d4   :  { %520 = vst.msk [vmem:[#allocation2 + $0x78] sm:$0xff] %vm317_vm5, %v495_v31 }
 0x1d5   :  { %518 = vst.msk [vmem:[#allocation2 + $0x68] sm:$0xff] %vm317_vm5, %v493_v33 }
 0x1d7   :  { %v880_v35 = vpop.f32.mrb[16].mxu1 }
 0x1d8   :  { %v685_v36 = vmul.f32 4.4444447, %v880_v35  ;;  %v652_v37 = vpop.f32.mrb[17].mxu1 }
 0x1d9   :  { %v683_v38 = vmul.f32 4.4444447, %v652_v37  ;;  %v881_v39 = vpop.f32.mrb[18].mxu1 }
 0x1da   :  { %v701_v40 = vadd.f32 %v691_v34, %v685_v36  ;;  %v686_v41 = vmul.f32 4.4444447, %v881_v39  ;;  %v655_v42 = vpop.f32.mrb[19].mxu1 }
 0x1db   :  { %v699_v43 = vadd.f32 %v691_v34, %v683_v38  ;;  %v684_v44 = vmul.f32 4.4444447, %v655_v42 }
 0x1dc   :  { %710 = vst.msk [vmem:[#allocation2 + $0x90] sm:$0xff] %vm317_vm5, %v701_v40  ;;  %v702_v45 = vadd.f32 %v691_v34, %v686_v41 }
 0x1dd   :  { %708 = vst.msk [vmem:[#allocation2 + $0x80] sm:$0xff] %vm317_vm5, %v699_v43  ;;  %v700_v46 = vadd.f32 %v691_v34, %v684_v44 }
 0x1de   :  { %711 = vst.msk [vmem:[#allocation2 + $0x98] sm:$0xff] %vm317_vm5, %v702_v45 }
 0x1df   :  { %709 = vst.msk [vmem:[#allocation2 + $0x88] sm:$0xff] %vm317_vm5, %v700_v46  ;;  %v884_v47 = vpop.f32.mrb[20].mxu1 }
 0x1e0   :  { %v689_v48 = vmul.f32 4.4444447, %v884_v47  ;;  %v668_v49 = vpop.f32.mrb[21].mxu1 }
 0x1e1   :  { %v687_v50 = vmul.f32 4.4444447, %v668_v49  ;;  %v885_v51 = vpop.f32.mrb[22].mxu1 }
 0x1e2   :  { %714 = vst.msk [vmem:[#allocation2 + $0xb0] sm:$0xff] %vm317_vm5, %v689_v48  ;;  %v690_v52 = vmul.f32 4.4444447, %v885_v51  ;;  %v671_v53 = vpop.f32.mrb[23].mxu1 }
 0x1e3   :  { %712 = vst.msk [vmem:[#allocation2 + $0xa0] sm:$0xff] %vm317_vm5, %v687_v50  ;;  %v688_v54 = vmul.f32 4.4444447, %v671_v53 }
 0x1e4   :  { %715 = vst.msk [vmem:[#allocation2 + $0xb8] sm:$0xff] %vm317_vm5, %v690_v52 }
 0x1e5   :  { %713 = vst.msk [vmem:[#allocation2 + $0xa8] sm:$0xff] %vm317_vm5, %v688_v54 }
 0x1e6   :  { %919 = shalt.err (!%p916_p4)
}
 0x1e7   :  { %s920_s11 = scalar_lea.hbm %s1068_s3, 3072  ;;  %s922_s16 = scalar_lea.hbm %s1068_s3, 6144 }
 0x1e8   :  { %p921_p5 = scmp.ne.s32.totalorder %s1068_s3, %s920_s11  ;;  %p923_p6 = scmp.lt.u32.totalorder %s922_s16, %s920_s11 }
 0x1e9   :  { %p924_p7 = scmp.lt.u32.totalorder %s920_s11, %s1068_s3 }
 0x1eb   :  { %p925_p8 = por %p924_p7, %p923_p6 }
 0x1ed   :  { %p926_p9 = pnand %p925_p8, %p921_p5 }
 0x1ef   :  { %929 = shalt.err (!%p926_p9)
}
 0x1f0   :  { %s934_s19 = smov 128   ;;  %s935_s20 = smov 8  }
 0x1f1   :  { %727 = dma.vmem_to_hbm [thread:$0]  %s722_s7, 3072, %s1068_s3, [#allocation3], %s934_s19, %s934_s19, %s935_s20  }
 0x1f2   :  { %930 = dma.done.wait [#allocation3], 3072  }
 0x1f3   :  { %931 = vsyncadd [#allocation3], 4294964224 }
 0x1f4   :  { %731 = vsyncpa [#allocation3], 1 }

</bundles_post_ra>
